<compile_context>
chip_gen: v7x
topology: tpu7x:2x2x1
jax: 0.10.0
libtpu: 0.0.40
codegen_flags: <defaults>
</compile_context>

<pallas_src>
import functools

import numpy as np
import jax
import jax.numpy as jnp
from jax.experimental import pallas as pl
from jax.experimental.pallas import tpu as pltpu


def _round_up(x, m):
    return ((x + m - 1) // m) * m


def _largest_divisor_leq(n, cap):
    for d in range(min(n, cap), 0, -1):
        if n % d == 0:
            return d
    return 1


_VMEM_LIMIT = 32 * 1024 * 1024  # fits scoped VMEM on v5e/v6e/v7x


# ----------------------------------------------------------------------------
# Pallas kernels
# ----------------------------------------------------------------------------
def _gemm_bias_act_kernel(a_ref, w_ref, b_ref, o_ref, *, apply_relu):
    """o = act(a @ w + b); a:(TM,K) bf16, w:(K,N) bf16, b:(1,N) f32, o:(TM,N) f32."""
    acc = jnp.dot(a_ref[...], w_ref[...], preferred_element_type=jnp.float32)
    acc = acc + b_ref[...]
    if apply_relu:
        acc = jnp.maximum(acc, 0.0)
    o_ref[...] = acc


def _absdiff_gemm_bias_kernel(a1_ref, a2_ref, w_ref, b_ref, o_ref):
    """o = |a2 - a1| @ w + b  (absdiff fused under the MXU GEMM)."""
    diff = jnp.abs(a2_ref[...] - a1_ref[...])
    acc = jnp.dot(diff, w_ref[...], preferred_element_type=jnp.float32)
    o_ref[...] = acc + b_ref[...]


def _upsample_bilinear_kernel(l_ref, mh_ref, mwt_ref, o_ref, *, tn):
    """Block of TN (batch*channel) slabs: out[n] = Mh @ L[n] @ Mw^T."""
    mh = mh_ref[...]
    mwt = mwt_ref[...]
    for n in range(tn):  # tn <= 8, static unroll
        t = jnp.dot(mh, l_ref[n], preferred_element_type=jnp.float32)
        o_ref[n] = jnp.dot(t, mwt, preferred_element_type=jnp.float32)


# ----------------------------------------------------------------------------
# Pallas wrappers (tiling / specs / compiler params)
# ----------------------------------------------------------------------------
def pallas_gemm_bias_act(a, w, b, *, relu, tile_m=1024):
    """M-tiled GEMM with fused bias (+ReLU). bf16 MXU operands, f32 accum."""
    M, K = a.shape
    N = w.shape[1]
    Kp = _round_up(K, 16)
    if Kp != K:
        a = jnp.pad(a, ((0, 0), (0, Kp - K)))
        w = jnp.pad(w, ((0, Kp - K), (0, 0)))
    a = a.astype(jnp.bfloat16)
    w = w.astype(jnp.bfloat16)
    b2 = b.astype(jnp.float32).reshape(1, N)

    tm = M if M <= tile_m else tile_m
    grid_m = pl.cdiv(M, tm)
    kern = functools.partial(_gemm_bias_act_kernel, apply_relu=relu)
    cost = pl.CostEstimate(
        flops=2 * M * Kp * N,
        transcendentals=0,
        bytes_accessed=M * Kp * 2 + Kp * N * 2 + N * 4 + M * N * 4,
    )
    return pl.pallas_call(
        kern,
        out_shape=jax.ShapeDtypeStruct((M, N), jnp.float32),
        grid=(grid_m,),
        in_specs=[
            pl.BlockSpec((tm, Kp), lambda i: (i, 0)),
            pl.BlockSpec((Kp, N), lambda i: (0, 0)),
            pl.BlockSpec((1, N), lambda i: (0, 0)),
        ],
        out_specs=pl.BlockSpec((tm, N), lambda i: (i, 0)),
        compiler_params=pltpu.CompilerParams(
            dimension_semantics=("parallel",),
            vmem_limit_bytes=_VMEM_LIMIT,
        ),
        cost_estimate=cost,
    )(a, w, b2)


def pallas_absdiff_gemm_bias(a1, a2, w, b, *, tile_m=1024):
    """out = |a2 - a1| @ w + b, M-tiled, bf16 MXU operands, f32 accumulation.

    N is zero-padded to a multiple of 8 lanes (num_classes can be 2); padded
    columns are sliced off before returning.
    """
    M, K = a1.shape
    N = w.shape[1]
    Kp = _round_up(K, 16)
    Np = _round_up(N, 8)
    if Kp != K:
        a1 = jnp.pad(a1, ((0, 0), (0, Kp - K)))
        a2 = jnp.pad(a2, ((0, 0), (0, Kp - K)))
        w = jnp.pad(w, ((0, Kp - K), (0, 0)))
    if Np != N:
        w = jnp.pad(w, ((0, 0), (0, Np - N)))
        b = jnp.pad(b.reshape(-1), (0, Np - N))
    a1 = a1.astype(jnp.bfloat16)
    a2 = a2.astype(jnp.bfloat16)
    w = w.astype(jnp.bfloat16)
    b2 = b.astype(jnp.float32).reshape(1, Np)

    tm = M if M <= tile_m else tile_m
    grid_m = pl.cdiv(M, tm)
    cost = pl.CostEstimate(
        flops=2 * M * Kp * Np + 2 * M * Kp,
        transcendentals=0,
        bytes_accessed=2 * M * Kp * 2 + Kp * Np * 2 + Np * 4 + M * Np * 4,
    )
    out = pl.pallas_call(
        _absdiff_gemm_bias_kernel,
        out_shape=jax.ShapeDtypeStruct((M, Np), jnp.float32),
        grid=(grid_m,),
        in_specs=[
            pl.BlockSpec((tm, Kp), lambda i: (i, 0)),
            pl.BlockSpec((tm, Kp), lambda i: (i, 0)),
            pl.BlockSpec((Kp, Np), lambda i: (0, 0)),
            pl.BlockSpec((1, Np), lambda i: (0, 0)),
        ],
        out_specs=pl.BlockSpec((tm, Np), lambda i: (i, 0)),
        compiler_params=pltpu.CompilerParams(
            dimension_semantics=("parallel",),
            vmem_limit_bytes=_VMEM_LIMIT,
        ),
        cost_estimate=cost,
    )(a1, a2, w, b2)
    return out[:, :N]


def pallas_bilinear_upsample_nchw(logits_bhwc, H, W, *, max_slabs_per_step=8):
    """(B, Hh, Wh, nc) -> (B, nc, H, W); bilinear, align_corners=True.

    Both upsample matmuls are fused in one kernel; a block of TN (batch,channel)
    slabs is processed per grid step so Mh / Mw^T stay resident and per-step
    overhead is amortized.
    """
    B, Hh, Wh, nc = logits_bhwc.shape
    Mh = jnp.asarray(bilinear_matrix(H, Hh))        # (H, Hh), compile-time const
    MwT = jnp.asarray(bilinear_matrix(W, Wh).T)     # (Wh, W)
    l3d = jnp.transpose(logits_bhwc, (0, 3, 1, 2)).reshape(B * nc, Hh, Wh)
    l3d = l3d.astype(jnp.float32)

    n_slabs = B * nc
    tn = _largest_divisor_leq(n_slabs, max_slabs_per_step)
    grid_n = n_slabs // tn
    kern = functools.partial(_upsample_bilinear_kernel, tn=tn)

    cost = pl.CostEstimate(
        flops=2 * n_slabs * (H * Hh * Wh + H * Wh * W),
        transcendentals=0,
        bytes_accessed=(n_slabs * Hh * Wh + H * Hh + Wh * W + n_slabs * H * W) * 4,
    )
    out = pl.pallas_call(
        kern,
        out_shape=jax.ShapeDtypeStruct((n_slabs, H, W), jnp.float32),
        grid=(grid_n,),
        in_specs=[
            pl.BlockSpec((tn, Hh, Wh), lambda i: (i, 0, 0)),
            pl.BlockSpec((H, Hh), lambda i: (0, 0)),
            pl.BlockSpec((Wh, W), lambda i: (0, 0)),
        ],
        out_specs=pl.BlockSpec((tn, H, W), lambda i: (i, 0, 0)),
        compiler_params=pltpu.CompilerParams(
            dimension_semantics=("parallel",),
            vmem_limit_bytes=_VMEM_LIMIT,
        ),
        cost_estimate=cost,
    )(l3d, Mh, MwT)
    return out.reshape(B, nc, H, W)


# ----------------------------------------------------------------------------
# Glue: im2col, bilinear interpolation matrices, parameter init
# ----------------------------------------------------------------------------
# TODO(synk): im2col is still built host-side (9x-expanded patch tensor); a
# further win is generating the 9 shifted reads per M-tile inside the kernel.
def im2col(x_nhwc, kh, kw, stride, pad):
    """x: (B,H,W,C) -> patches (B*Ho*Wo, kh*kw*C), plus (Ho, Wo)."""
    B, H, W, C = x_nhwc.shape
    xp = jnp.pad(x_nhwc, ((0, 0), (pad, pad), (pad, pad), (0, 0)))
    Ho = (H + 2 * pad - kh) // stride + 1
    Wo = (W + 2 * pad - kw) // stride + 1
    cols = []
    for i in range(kh):
        for j in range(kw):
            cols.append(xp[:, i:i + stride * Ho:stride, j:j + stride * Wo:stride, :])
    patches = jnp.stack(cols, axis=-2)  # (B, Ho, Wo, kh*kw, C)
    return patches.reshape(B * Ho * Wo, kh * kw * C), Ho, Wo


def bilinear_matrix(out_size, in_size):
    """Row-stochastic (out,in) numpy matrix == F.interpolate(..., align_corners=True)."""
    M = np.zeros((out_size, in_size), np.float32)
    if out_size == 1 or in_size == 1:
        M[:, 0] = 1.0
        return M
    scale = (in_size - 1) / (out_size - 1)
    pos = np.arange(out_size, dtype=np.float64) * scale
    low = np.clip(np.floor(pos).astype(np.int64), 0, in_size - 1)
    high = np.clip(low + 1, 0, in_size - 1)
    frac = (pos - low).astype(np.float32)
    rows = np.arange(out_size)
    np.add.at(M, (rows, low), 1.0 - frac)
    np.add.at(M, (rows, high), frac)
    return M


def init_params(key, c_in=3, c1=16, c2=32, num_classes=2):
    k1, k2, k3 = jax.random.split(key, 3)
    return {
        "w1": 0.1 * jax.random.normal(k1, (3 * 3 * c_in, c1), jnp.float32),
        "b1": jnp.zeros((c1,), jnp.float32),
        "w2": 0.1 * jax.random.normal(k2, (3 * 3 * c1, c2), jnp.float32),
        "b2": jnp.zeros((c2,), jnp.float32),
        "head_w": 0.1 * jax.random.normal(k3, (3 * 3 * c2, num_classes), jnp.float32),
        "head_b": jnp.zeros((num_classes,), jnp.float32),
    }


# ----------------------------------------------------------------------------
# Forward pass (BaseNet.forward with tta=False)
# ----------------------------------------------------------------------------
def backbone_forward(params, x_nhwc):
    B2 = x_nhwc.shape[0]
    p1, h1, w1 = im2col(x_nhwc, 3, 3, stride=2, pad=1)
    c1 = params["w1"].shape[1]
    f1 = pallas_gemm_bias_act(p1, params["w1"], params["b1"], relu=True)
    f1 = f1.reshape(B2, h1, w1, c1)
    p2, h2, w2 = im2col(f1, 3, 3, stride=2, pad=1)
    c2 = params["w2"].shape[1]
    f2 = pallas_gemm_bias_act(p2, params["w2"], params["b2"], relu=True)
    return f2.reshape(B2, h2, w2, c2)  # last backbone feature map


def basenet_forward(params, x1_nchw, x2_nchw):
    B, C, H, W = x1_nchw.shape
    # Single backbone pass over the concatenated change-pair batch.
    xcat = jnp.concatenate([x1_nchw, x2_nchw], axis=0)
    xcat = jnp.transpose(xcat, (0, 2, 3, 1)).astype(jnp.float32)  # NHWC
    feat = backbone_forward(params, xcat)            # (2B, Hs, Ws, Cf)
    _, Hs, Ws, Cf = feat.shape

    # head(|f2 - f1|) -- conv3x3, stride 1, pad 1.
    # im2col(|f2 - f1|) == |im2col(f2) - im2col(f1)| (zero padding preserved),
    # so the absdiff is fused into the head GEMM kernel.
    ph, Hh, Wh = im2col(feat, 3, 3, stride=1, pad=1)  # (2B*Hs*Ws, 9*Cf)
    half = B * Hh * Wh
    p1h, p2h = ph[:half], ph[half:]
    nc = params["head_w"].shape[1]
    logits = pallas_absdiff_gemm_bias(p1h, p2h, params["head_w"], params["head_b"])
    logits = logits.reshape(B, Hh, Wh, nc)

    # F.interpolate(..., size=(H, W), mode='bilinear', align_corners=True)
    # as a fused per-(batch, channel)-block Mh @ X @ Mw^T kernel -> NCHW directly.
    return pallas_bilinear_upsample_nchw(logits, H, W)  # (B, nc, H, W)


# TODO(synk): the tta=True branch of BaseNet.forward references (out1, out2,
# out_bin) that only subclasses produce; only the tta=False path is implemented.

if __name__ == "__main__":
    key = jax.random.PRNGKey(0)
    kp, kx1, kx2 = jax.random.split(key, 3)

    B, C, H, W = 2, 3, 16, 16
    params = init_params(kp, c_in=C, c1=16, c2=32, num_classes=2)
    x1 = jax.random.normal(kx1, (B, C, H, W), jnp.float32)
    x2 = jax.random.normal(kx2, (B, C, H, W), jnp.float32)

    out = jax.jit(basenet_forward)(params, x1, x2)
    out = jax.block_until_ready(out)
    assert out.shape == (B, 2, H, W), out.shape
    print("KERNEL_OK")
</pallas_src>

<mosaic_0001>
module attributes {stable_mosaic.version = 11 : i64} {
  func.func @_gemm_bias_act_kernel(%arg0: i32, %arg1: memref<256x32xbf16, #tpu.memory_space<vmem>>, %arg2: memref<32x16xbf16, #tpu.memory_space<vmem>>, %arg3: memref<1x16xf32, #tpu.memory_space<vmem>>, %arg4: memref<256x16xf32, #tpu.memory_space<vmem>>) attributes {dimension_semantics = [#tpu.dimension_semantics<parallel>], iteration_bounds = array<i64: 1>, scalar_prefetch = 0 : i64, scratch_operands = 0 : i64, tpu.core_type = #tpu.core_type<tc>, window_params = [{transform_indices = @transform_0, window_bounds = array<i64: 256, 32>}, {pipeline_mode = #tpu.pipeline_mode<synchronous>, transform_indices = @transform_1, window_bounds = array<i64: 32, 16>}, {pipeline_mode = #tpu.pipeline_mode<synchronous>, transform_indices = @transform_2, window_bounds = array<i64: 1, 16>}, {transform_indices = @transform_3, window_bounds = array<i64: 256, 16>}]} {
    %c0 = arith.constant 0 : index
    %c0_0 = arith.constant 0 : index
    %0 = vector.load %arg1[%c0, %c0_0] : memref<256x32xbf16, #tpu.memory_space<vmem>>, vector<256x32xbf16>
    %c0_1 = arith.constant 0 : index
    %c0_2 = arith.constant 0 : index
    %1 = vector.load %arg2[%c0_1, %c0_2] : memref<32x16xbf16, #tpu.memory_space<vmem>>, vector<32x16xbf16>
    %cst = arith.constant dense<0.000000e+00> : vector<256x16xf32>
    %2 = tpu.matmul %0, %1, %cst {dimension_numbers = #tpu.dot_dimension_numbers<[1], [0], [0], [1], [0, 0, 1, 1], [], []>} : vector<256x32xbf16>, vector<32x16xbf16>, vector<256x16xf32> -> vector<256x16xf32>
    %c0_3 = arith.constant 0 : index
    %c0_4 = arith.constant 0 : index
    %3 = vector.load %arg3[%c0_3, %c0_4] : memref<1x16xf32, #tpu.memory_space<vmem>>, vector<1x16xf32>
    %4 = vector.broadcast %3 : vector<1x16xf32> to vector<256x16xf32>
    %5 = arith.addf %2, %4 : vector<256x16xf32>
    %cst_5 = arith.constant 0.000000e+00 : f32
    %6 = vector.broadcast %cst_5 : f32 to vector<256x16xf32>
    %7 = arith.maximumf %5, %6 : vector<256x16xf32>
    %c0_6 = arith.constant 0 : index
    %c0_7 = arith.constant 0 : index
    %8 = vector.load %arg4[%c0_6, %c0_7] : memref<256x16xf32, #tpu.memory_space<vmem>>, vector<256x16xf32>
    tpu.vector_store %arg4[%c0_6, %c0_7], %7 {strides = array<i32>} : memref<256x16xf32, #tpu.memory_space<vmem>>, vector<256x16xf32>,
    return
  }
  func.func @transform_0(%arg0: i32) -> (i32, i32) {
    %c0_i32 = arith.constant 0 : i32
    %c0_i32_0 = arith.constant 0 : i32
    return %arg0, %c0_i32 : i32, i32
  }
  func.func @transform_1(%arg0: i32) -> (i32, i32) {
    %c0_i32 = arith.constant 0 : i32
    %c0_i32_0 = arith.constant 0 : i32
    %c0_i32_1 = arith.constant 0 : i32
    return %c0_i32, %c0_i32_0 : i32, i32
  }
  func.func @transform_2(%arg0: i32) -> (i32, i32) {
    %c0_i32 = arith.constant 0 : i32
    %c0_i32_0 = arith.constant 0 : i32
    %c0_i32_1 = arith.constant 0 : i32
    return %c0_i32, %c0_i32_0 : i32, i32
  }
  func.func @transform_3(%arg0: i32) -> (i32, i32) {
    %c0_i32 = arith.constant 0 : i32
    %c0_i32_0 = arith.constant 0 : i32
    return %arg0, %c0_i32 : i32, i32
  }
}

module attributes {stable_mosaic.version = 11 : i64} {
  func.func @_gemm_bias_act_kernel(%arg0: i32, %arg1: memref<64x144xbf16, #tpu.memory_space<vmem>>, %arg2: memref<144x32xbf16, #tpu.memory_space<vmem>>, %arg3: memref<1x32xf32, #tpu.memory_space<vmem>>, %arg4: memref<64x32xf32, #tpu.memory_space<vmem>>) attributes {dimension_semantics = [#tpu.dimension_semantics<parallel>], iteration_bounds = array<i64: 1>, scalar_prefetch = 0 : i64, scratch_operands = 0 : i64, tpu.core_type = #tpu.core_type<tc>, window_params = [{transform_indices = @transform_0, window_bounds = array<i64: 64, 144>}, {pipeline_mode = #tpu.pipeline_mode<synchronous>, transform_indices = @transform_1, window_bounds = array<i64: 144, 32>}, {pipeline_mode = #tpu.pipeline_mode<synchronous>, transform_indices = @transform_2, window_bounds = array<i64: 1, 32>}, {transform_indices = @transform_3, window_bounds = array<i64: 64, 32>}]} {
    %c0 = arith.constant 0 : index
    %c0_0 = arith.constant 0 : index
    %0 = vector.load %arg1[%c0, %c0_0] : memref<64x144xbf16, #tpu.memory_space<vmem>>, vector<64x144xbf16>
    %c0_1 = arith.constant 0 : index
    %c0_2 = arith.constant 0 : index
    %1 = vector.load %arg2[%c0_1, %c0_2] : memref<144x32xbf16, #tpu.memory_space<vmem>>, vector<144x32xbf16>
    %cst = arith.constant dense<0.000000e+00> : vector<64x32xf32>
    %2 = tpu.matmul %0, %1, %cst {dimension_numbers = #tpu.dot_dimension_numbers<[1], [0], [0], [1], [0, 0, 1, 1], [], []>} : vector<64x144xbf16>, vector<144x32xbf16>, vector<64x32xf32> -> vector<64x32xf32>
    %c0_3 = arith.constant 0 : index
    %c0_4 = arith.constant 0 : index
    %3 = vector.load %arg3[%c0_3, %c0_4] : memref<1x32xf32, #tpu.memory_space<vmem>>, vector<1x32xf32>
    %4 = vector.broadcast %3 : vector<1x32xf32> to vector<64x32xf32>
    %5 = arith.addf %2, %4 : vector<64x32xf32>
    %cst_5 = arith.constant 0.000000e+00 : f32
    %6 = vector.broadcast %cst_5 : f32 to vector<64x32xf32>
    %7 = arith.maximumf %5, %6 : vector<64x32xf32>
    %c0_6 = arith.constant 0 : index
    %c0_7 = arith.constant 0 : index
    %8 = vector.load %arg4[%c0_6, %c0_7] : memref<64x32xf32, #tpu.memory_space<vmem>>, vector<64x32xf32>
    tpu.vector_store %arg4[%c0_6, %c0_7], %7 {strides = array<i32>} : memref<64x32xf32, #tpu.memory_space<vmem>>, vector<64x32xf32>,
    return
  }
  func.func @transform_0(%arg0: i32) -> (i32, i32) {
    %c0_i32 = arith.constant 0 : i32
    %c0_i32_0 = arith.constant 0 : i32
    return %arg0, %c0_i32 : i32, i32
  }
  func.func @transform_1(%arg0: i32) -> (i32, i32) {
    %c0_i32 = arith.constant 0 : i32
    %c0_i32_0 = arith.constant 0 : i32
    %c0_i32_1 = arith.constant 0 : i32
    return %c0_i32, %c0_i32_0 : i32, i32
  }
  func.func @transform_2(%arg0: i32) -> (i32, i32) {
    %c0_i32 = arith.constant 0 : i32
    %c0_i32_0 = arith.constant 0 : i32
    %c0_i32_1 = arith.constant 0 : i32
    return %c0_i32, %c0_i32_0 : i32, i32
  }
  func.func @transform_3(%arg0: i32) -> (i32, i32) {
    %c0_i32 = arith.constant 0 : i32
    %c0_i32_0 = arith.constant 0 : i32
    return %arg0, %c0_i32 : i32, i32
  }
}

module attributes {stable_mosaic.version = 11 : i64} {
  func.func @_upsample_bilinear_kernel(%arg0: i32, %arg1: memref<4x4x4xf32, #tpu.memory_space<vmem>>, %arg2: memref<16x4xf32, #tpu.memory_space<vmem>>, %arg3: memref<4x16xf32, #tpu.memory_space<vmem>>, %arg4: memref<4x16x16xf32, #tpu.memory_space<vmem>>) attributes {dimension_semantics = [#tpu.dimension_semantics<parallel>], iteration_bounds = array<i64: 1>, scalar_prefetch = 0 : i64, scratch_operands = 0 : i64, tpu.core_type = #tpu.core_type<tc>, window_params = [{transform_indices = @transform_0, window_bounds = array<i64: 4, 4, 4>}, {pipeline_mode = #tpu.pipeline_mode<synchronous>, transform_indices = @transform_1, window_bounds = array<i64: 16, 4>}, {pipeline_mode = #tpu.pipeline_mode<synchronous>, transform_indices = @transform_2, window_bounds = array<i64: 4, 16>}, {transform_indices = @transform_3, window_bounds = array<i64: 4, 16, 16>}]} {
    %c0 = arith.constant 0 : index
    %c0_0 = arith.constant 0 : index
    %0 = vector.load %arg2[%c0, %c0_0] : memref<16x4xf32, #tpu.memory_space<vmem>>, vector<16x4xf32>
    %c0_1 = arith.constant 0 : index
    %c0_2 = arith.constant 0 : index
    %1 = vector.load %arg3[%c0_1, %c0_2] : memref<4x16xf32, #tpu.memory_space<vmem>>, vector<4x16xf32>
    %c0_3 = arith.constant 0 : index
    %c0_4 = arith.constant 0 : index
    %c0_5 = arith.constant 0 : index
    %2 = vector.load %arg1[%c0_3, %c0_4, %c0_5] : memref<4x4x4xf32, #tpu.memory_space<vmem>>, vector<1x4x4xf32>
    %3 = vector.shape_cast %2 : vector<1x4x4xf32> to vector<4x4xf32>
    %cst = arith.constant dense<0.000000e+00> : vector<16x4xf32>
    %4 = tpu.matmul %0, %3, %cst {dimension_numbers = #tpu.dot_dimension_numbers<[1], [0], [0], [1], [0, 0, 1, 1], [], []>} : vector<16x4xf32>, vector<4x4xf32>, vector<16x4xf32> -> vector<16x4xf32>
    %cst_6 = arith.constant dense<0.000000e+00> : vector<16x16xf32>
    %5 = tpu.matmul %4, %1, %cst_6 {dimension_numbers = #tpu.dot_dimension_numbers<[1], [0], [0], [1], [0, 0, 1, 1], [], []>} : vector<16x4xf32>, vector<4x16xf32>, vector<16x16xf32> -> vector<16x16xf32>
    %c0_7 = arith.constant 0 : index
    %c0_8 = arith.constant 0 : index
    %c0_9 = arith.constant 0 : index
    %6 = vector.load %arg4[%c0_7, %c0_8, %c0_9] : memref<4x16x16xf32, #tpu.memory_space<vmem>>, vector<1x16x16xf32>
    %7 = vector.shape_cast %6 : vector<1x16x16xf32> to vector<16x16xf32>
    %8 = vector.shape_cast %5 : vector<16x16xf32> to vector<1x16x16xf32>
    tpu.vector_store %arg4[%c0_7, %c0_8, %c0_9], %8 {strides = array<i32>} : memref<4x16x16xf32, #tpu.memory_space<vmem>>, vector<1x16x16xf32>,
    %c1 = arith.constant 1 : index
    %c0_10 = arith.constant 0 : index
    %c0_11 = arith.constant 0 : index
    %9 = vector.load %arg1[%c1, %c0_10, %c0_11] : memref<4x4x4xf32, #tpu.memory_space<vmem>>, vector<1x4x4xf32>
    %10 = vector.shape_cast %9 : vector<1x4x4xf32> to vector<4x4xf32>
    %cst_12 = arith.constant dense<0.000000e+00> : vector<16x4xf32>
    %11 = tpu.matmul %0, %10, %cst_12 {dimension_numbers = #tpu.dot_dimension_numbers<[1], [0], [0], [1], [0, 0, 1, 1], [], []>} : vector<16x4xf32>, vector<4x4xf32>, vector<16x4xf32> -> vector<16x4xf32>
    %cst_13 = arith.constant dense<0.000000e+00> : vector<16x16xf32>
    %12 = tpu.matmul %11, %1, %cst_13 {dimension_numbers = #tpu.dot_dimension_numbers<[1], [0], [0], [1], [0, 0, 1, 1], [], []>} : vector<16x4xf32>, vector<4x16xf32>, vector<16x16xf32> -> vector<16x16xf32>
    %c1_14 = arith.constant 1 : index
    %c0_15 = arith.constant 0 : index
    %c0_16 = arith.constant 0 : index
    %13 = vector.load %arg4[%c1_14, %c0_15, %c0_16] : memref<4x16x16xf32, #tpu.memory_space<vmem>>, vector<1x16x16xf32>
    %14 = vector.shape_cast %13 : vector<1x16x16xf32> to vector<16x16xf32>
    %15 = vector.shape_cast %12 : vector<16x16xf32> to vector<1x16x16xf32>
    tpu.vector_store %arg4[%c1_14, %c0_15, %c0_16], %15 {strides = array<i32>} : memref<4x16x16xf32, #tpu.memory_space<vmem>>, vector<1x16x16xf32>,
    %c2 = arith.constant 2 : index
    %c0_17 = arith.constant 0 : index
    %c0_18 = arith.constant 0 : index
    %16 = vector.load %arg1[%c2, %c0_17, %c0_18] : memref<4x4x4xf32, #tpu.memory_space<vmem>>, vector<1x4x4xf32>
    %17 = vector.shape_cast %16 : vector<1x4x4xf32> to vector<4x4xf32>
    %cst_19 = arith.constant dense<0.000000e+00> : vector<16x4xf32>
    %18 = tpu.matmul %0, %17, %cst_19 {dimension_numbers = #tpu.dot_dimension_numbers<[1], [0], [0], [1], [0, 0, 1, 1], [], []>} : vector<16x4xf32>, vector<4x4xf32>, vector<16x4xf32> -> vector<16x4xf32>
    %cst_20 = arith.constant dense<0.000000e+00> : vector<16x16xf32>
    %19 = tpu.matmul %18, %1, %cst_20 {dimension_numbers = #tpu.dot_dimension_numbers<[1], [0], [0], [1], [0, 0, 1, 1], [], []>} : vector<16x4xf32>, vector<4x16xf32>, vector<16x16xf32> -> vector<16x16xf32>
    %c2_21 = arith.constant 2 : index
    %c0_22 = arith.constant 0 : index
    %c0_23 = arith.constant 0 : index
    %20 = vector.load %arg4[%c2_21, %c0_22, %c0_23] : memref<4x16x16xf32, #tpu.memory_space<vmem>>, vector<1x16x16xf32>
    %21 = vector.shape_cast %20 : vector<1x16x16xf32> to vector<16x16xf32>
    %22 = vector.shape_cast %19 : vector<16x16xf32> to vector<1x16x16xf32>
    tpu.vector_store %arg4[%c2_21, %c0_22, %c0_23], %22 {strides = array<i32>} : memref<4x16x16xf32, #tpu.memory_space<vmem>>, vector<1x16x16xf32>,
    %c3 = arith.constant 3 : index
    %c0_24 = arith.constant 0 : index
    %c0_25 = arith.constant 0 : index
    %23 = vector.load %arg1[%c3, %c0_24, %c0_25] : memref<4x4x4xf32, #tpu.memory_space<vmem>>, vector<1x4x4xf32>
    %24 = vector.shape_cast %23 : vector<1x4x4xf32> to vector<4x4xf32>
    %cst_26 = arith.constant dense<0.000000e+00> : vector<16x4xf32>
    %25 = tpu.matmul %0, %24, %cst_26 {dimension_numbers = #tpu.dot_dimension_numbers<[1], [0], [0], [1], [0, 0, 1, 1], [], []>} : vector<16x4xf32>, vector<4x4xf32>, vector<16x4xf32> -> vector<16x4xf32>
    %cst_27 = arith.constant dense<0.000000e+00> : vector<16x16xf32>
    %26 = tpu.matmul %25, %1, %cst_27 {dimension_numbers = #tpu.dot_dimension_numbers<[1], [0], [0], [1], [0, 0, 1, 1], [], []>} : vector<16x4xf32>, vector<4x16xf32>, vector<16x16xf32> -> vector<16x16xf32>
    %c3_28 = arith.constant 3 : index
    %c0_29 = arith.constant 0 : index
    %c0_30 = arith.constant 0 : index
    %27 = vector.load %arg4[%c3_28, %c0_29, %c0_30] : memref<4x16x16xf32, #tpu.memory_space<vmem>>, vector<1x16x16xf32>
    %28 = vector.shape_cast %27 : vector<1x16x16xf32> to vector<16x16xf32>
    %29 = vector.shape_cast %26 : vector<16x16xf32> to vector<1x16x16xf32>
    tpu.vector_store %arg4[%c3_28, %c0_29, %c0_30], %29 {strides = array<i32>} : memref<4x16x16xf32, #tpu.memory_space<vmem>>, vector<1x16x16xf32>,
    return
  }
  func.func @transform_0(%arg0: i32) -> (i32, i32, i32) {
    %c0_i32 = arith.constant 0 : i32
    %c0_i32_0 = arith.constant 0 : i32
    %c0_i32_1 = arith.constant 0 : i32
    return %arg0, %c0_i32, %c0_i32_0 : i32, i32, i32
  }
  func.func @transform_1(%arg0: i32) -> (i32, i32) {
    %c0_i32 = arith.constant 0 : i32
    %c0_i32_0 = arith.constant 0 : i32
    %c0_i32_1 = arith.constant 0 : i32
    return %c0_i32, %c0_i32_0 : i32, i32
  }
  func.func @transform_2(%arg0: i32) -> (i32, i32) {
    %c0_i32 = arith.constant 0 : i32
    %c0_i32_0 = arith.constant 0 : i32
    %c0_i32_1 = arith.constant 0 : i32
    return %c0_i32, %c0_i32_0 : i32, i32
  }
  func.func @transform_3(%arg0: i32) -> (i32, i32, i32) {
    %c0_i32 = arith.constant 0 : i32
    %c0_i32_0 = arith.constant 0 : i32
    %c0_i32_1 = arith.constant 0 : i32
    return %arg0, %c0_i32, %c0_i32_0 : i32, i32, i32
  }
}

module attributes {stable_mosaic.version = 11 : i64} {
  func.func @_absdiff_gemm_bias_kernel(%arg0: i32, %arg1: memref<32x288xbf16, #tpu.memory_space<vmem>>, %arg2: memref<32x288xbf16, #tpu.memory_space<vmem>>, %arg3: memref<288x8xbf16, #tpu.memory_space<vmem>>, %arg4: memref<1x8xf32, #tpu.memory_space<vmem>>, %arg5: memref<32x8xf32, #tpu.memory_space<vmem>>) attributes {dimension_semantics = [#tpu.dimension_semantics<parallel>], iteration_bounds = array<i64: 1>, scalar_prefetch = 0 : i64, scratch_operands = 0 : i64, tpu.core_type = #tpu.core_type<tc>, window_params = [{transform_indices = @transform_0, window_bounds = array<i64: 32, 288>}, {transform_indices = @transform_1, window_bounds = array<i64: 32, 288>}, {pipeline_mode = #tpu.pipeline_mode<synchronous>, transform_indices = @transform_2, window_bounds = array<i64: 288, 8>}, {pipeline_mode = #tpu.pipeline_mode<synchronous>, transform_indices = @transform_3, window_bounds = array<i64: 1, 8>}, {transform_indices = @transform_4, window_bounds = array<i64: 32, 8>}]} {
    %c0 = arith.constant 0 : index
    %c0_0 = arith.constant 0 : index
    %0 = vector.load %arg2[%c0, %c0_0] : memref<32x288xbf16, #tpu.memory_space<vmem>>, vector<32x288xbf16>
    %c0_1 = arith.constant 0 : index
    %c0_2 = arith.constant 0 : index
    %1 = vector.load %arg1[%c0_1, %c0_2] : memref<32x288xbf16, #tpu.memory_space<vmem>>, vector<32x288xbf16>
    %2 = arith.subf %0, %1 : vector<32x288xbf16>
    %3 = math.absf %2 : vector<32x288xbf16>
    %c0_3 = arith.constant 0 : index
    %c0_4 = arith.constant 0 : index
    %4 = vector.load %arg3[%c0_3, %c0_4] : memref<288x8xbf16, #tpu.memory_space<vmem>>, vector<288x8xbf16>
    %cst = arith.constant dense<0.000000e+00> : vector<32x8xf32>
    %5 = tpu.matmul %3, %4, %cst {dimension_numbers = #tpu.dot_dimension_numbers<[1], [0], [0], [1], [0, 0, 1, 1], [], []>} : vector<32x288xbf16>, vector<288x8xbf16>, vector<32x8xf32> -> vector<32x8xf32>
    %c0_5 = arith.constant 0 : index
    %c0_6 = arith.constant 0 : index
    %6 = vector.load %arg4[%c0_5, %c0_6] : memref<1x8xf32, #tpu.memory_space<vmem>>, vector<1x8xf32>
    %7 = vector.broadcast %6 : vector<1x8xf32> to vector<32x8xf32>
    %8 = arith.addf %5, %7 : vector<32x8xf32>
    %c0_7 = arith.constant 0 : index
    %c0_8 = arith.constant 0 : index
    %9 = vector.load %arg5[%c0_7, %c0_8] : memref<32x8xf32, #tpu.memory_space<vmem>>, vector<32x8xf32>
    tpu.vector_store %arg5[%c0_7, %c0_8], %8 {strides = array<i32>} : memref<32x8xf32, #tpu.memory_space<vmem>>, vector<32x8xf32>,
    return
  }
  func.func @transform_0(%arg0: i32) -> (i32, i32) {
    %c0_i32 = arith.constant 0 : i32
    %c0_i32_0 = arith.constant 0 : i32
    return %arg0, %c0_i32 : i32, i32
  }
  func.func @transform_1(%arg0: i32) -> (i32, i32) {
    %c0_i32 = arith.constant 0 : i32
    %c0_i32_0 = arith.constant 0 : i32
    return %arg0, %c0_i32 : i32, i32
  }
  func.func @transform_2(%arg0: i32) -> (i32, i32) {
    %c0_i32 = arith.constant 0 : i32
    %c0_i32_0 = arith.constant 0 : i32
    %c0_i32_1 = arith.constant 0 : i32
    return %c0_i32, %c0_i32_0 : i32, i32
  }
  func.func @transform_3(%arg0: i32) -> (i32, i32) {
    %c0_i32 = arith.constant 0 : i32
    %c0_i32_0 = arith.constant 0 : i32
    %c0_i32_1 = arith.constant 0 : i32
    return %c0_i32, %c0_i32_0 : i32, i32
  }
  func.func @transform_4(%arg0: i32) -> (i32, i32) {
    %c0_i32 = arith.constant 0 : i32
    %c0_i32_0 = arith.constant 0 : i32
    return %arg0, %c0_i32 : i32, i32
  }
}

</mosaic_0001>

<bundles_post_ra>
// kernel: basenet_forward.4
= control target key start
LH: loop header
LB: loop body
LE: loop exit
PB: predicated region body
PF: predicated region fallthrough
CT: control target
= control target key end

     0   :  { %vm150_vm0 = vcmask 261120   ;;  %vm392_vm1 = vcmask 130048   ;;  %s795_s1 = inlined_call_operand.vmem [shape: bf16[32,16], index: 1, kind: input, shape index: {}]   ;;  %s796_s0 = inlined_call_operand.vmem [shape: bf16[256,32], index: 0, kind: input, shape index: {}]   ;;  %s797_s2 = inlined_call_operand.vmem [shape: f32[1,16], index: 2, kind: input, shape index: {}]   ;;  %s798_s3 = inlined_call_operand.vmem [shape: f32[256,16], index: 3, kind: output, shape index: {}]  }
   0x1   :  { %v522_v0 = vld [vmem:[%s795_s1] sm:$0xff]   ;;  %v523_v1 = vld [vmem:[%s795_s1 + $0x8] sm:$0xff]   ;;  %v528_v6 = vld [vmem:[%s796_s0 + $0x10] sm:$0xff]  }
   0x2   :  { %482 = vmatprep.subr.bf16.mxu0 %v522_v0  ;;  %518 = vmatprep.subr.bf16.mxu1 %v522_v0  ;;  %v524_v2 = vld [vmem:[%s796_s0] sm:$0xff]   ;;  %v526_v4 = vld [vmem:[%s796_s0 + $0x8] sm:$0xff]   ;;  %v529_v7 = vld [vmem:[%s796_s0 + $0x50] sm:$0xff]  }
   0x3   :  { %483 = vmatpush3.bf16.msra.mxu0 %v522_v0  ;;  %520 = vmatpush3.bf16.msra.mxu1 %v522_v0  ;;  %v525_v3 = vld [vmem:[%s796_s0 + $0x40] sm:$0xff]   ;;  %v527_v5 = vld [vmem:[%s796_s0 + $0x48] sm:$0xff]   ;;  %v530_v8 = vld [vmem:[%s796_s0 + $0x18] sm:$0xff]  }
   0x4   :  { %484 = vmatprep.subr.bf16.mxu0 %v523_v1  ;;  %519 = vmatprep.subr.bf16.mxu1 %v523_v1  ;;  %v531_v9 = vld [vmem:[%s796_s0 + $0x58] sm:$0xff]   ;;  %v532_v10 = vld [vmem:[%s796_s0 + $0x20] sm:$0xff]   ;;  %v534_v12 = vld [vmem:[%s796_s0 + $0x28] sm:$0xff]  }
   0x5   :  { %486 = vmatprep.mubr.msk.bf16.mxu0 %vm150_vm0, %v524_v2  ;;  %502 = vmatprep.mubr.msk.bf16.mxu1 %vm150_vm0, %v525_v3  ;;  %v533_v11 = vld [vmem:[%s796_s0 + $0x60] sm:$0xff]   ;;  %v535_v13 = vld [vmem:[%s796_s0 + $0x68] sm:$0xff]   ;;  %v536_v14 = vld [vmem:[%s796_s0 + $0x30] sm:$0xff]  }
   0x6   :  { %v537_v15 = vld [vmem:[%s796_s0 + $0x70] sm:$0xff]   ;;  %v538_v16 = vld [vmem:[%s796_s0 + $0x38] sm:$0xff]   ;;  %v633_v18 = vld [vmem:[%s797_s2] ss:$0 sm:$0xff] }
   0x7   :  { %485 = vmatpush3.bf16.msra.mxu0 %v523_v1  ;;  %521 = vmatpush3.bf16.msra.mxu1 %v523_v1  ;;  %v539_v17 = vld [vmem:[%s796_s0 + $0x78] sm:$0xff]  }
   0xa   :  { %487 = vmatmul.mubr.msk.bf16.vlgmr.msra.gmra.mrb[0].mxu0 %vm150_vm0, %v526_v4  ;;  %503 = vmatmul.mubr.msk.bf16.vlgmr.msra.gmra.mrb[0].mxu1 %vm150_vm0, %v527_v5 }
   0xb   :  { %490 = vmatprep.mubr.msk.bf16.mxu0 %vm150_vm0, %v528_v6  ;;  %506 = vmatprep.mubr.msk.bf16.mxu1 %vm150_vm0, %v529_v7 }
  0x12   :  { %491 = vmatmul.mubr.msk.bf16.gmra.mrb[4].mxu0 %vm150_vm0, %v530_v8  ;;  %507 = vmatmul.mubr.msk.bf16.gmra.mrb[4].mxu1 %vm150_vm0, %v531_v9 }
  0x13   :  { %494 = vmatprep.mubr.msk.bf16.mxu0 %vm150_vm0, %v532_v10  ;;  %510 = vmatprep.mubr.msk.bf16.mxu1 %vm150_vm0, %v533_v11 }
  0x1a   :  { %495 = vmatmul.mubr.msk.bf16.gmra.mrb[8].mxu0 %vm150_vm0, %v534_v12  ;;  %511 = vmatmul.mubr.msk.bf16.gmra.mrb[8].mxu1 %vm150_vm0, %v535_v13 }
  0x1b   :  { %498 = vmatprep.mubr.msk.bf16.mxu0 %vm150_vm0, %v536_v14  ;;  %514 = vmatprep.mubr.msk.bf16.mxu1 %vm150_vm0, %v537_v15 }
  0x22   :  { %499 = vmatmul.mubr.msk.bf16.gmra.mrb[12].mxu0 %vm150_vm0, %v538_v16  ;;  %515 = vmatmul.mubr.msk.bf16.gmra.mrb[12].mxu1 %vm150_vm0, %v539_v17 }
  0xdd   :  { %v488_v19 = vpop.f32.mrb[0].mxu0  ;;  %v504_v20 = vpop.f32.mrb[0].mxu1 }
  0xde   :  { %v242_v21 = vadd.f32 %v488_v19, %v633_v18  ;;  %v306_v22 = vadd.f32 %v504_v20, %v633_v18  ;;  %v233_v23 = vpop.f32.mrb[1].mxu0  ;;  %v297_v24 = vpop.f32.mrb[1].mxu1 }
  0xdf   :  { %v234_v25 = vadd.f32 %v633_v18, %v233_v23  ;;  %v298_v26 = vadd.f32 %v633_v18, %v297_v24  ;;  %v489_v27 = vpop.f32.mrb[2].mxu0  ;;  %v505_v28 = vpop.f32.mrb[2].mxu1 }
  0xe0   :  { %v362_v29 = vmax.f32 %v242_v21, 0.0  ;;  %v378_v30 = vmax.f32 %v306_v22, 0.0  ;;  %v245_v31 = vadd.f32 %v489_v27, %v633_v18  ;;  %v309_v32 = vadd.f32 %v505_v28, %v633_v18  ;;  %v236_v33 = vpop.f32.mrb[3].mxu0  ;;  %v300_v34 = vpop.f32.mrb[3].mxu1 }
  0xe1   :  { %v360_v35 = vmax.f32 %v234_v25, 0.0  ;;  %v376_v36 = vmax.f32 %v298_v26, 0.0  ;;  %v237_v37 = vadd.f32 %v633_v18, %v236_v33  ;;  %v301_v38 = vadd.f32 %v633_v18, %v300_v34 }
  0xe2   :  { %395 = vst.msk [vmem:[%s798_s3 + $0x10] sm:$0xff] %vm392_vm1, %v362_v29  ;;  %411 = vst.msk [vmem:[%s798_s3 + $0x90] sm:$0xff] %vm392_vm1, %v378_v30  ;;  %v363_v39 = vmax.f32 %v245_v31, 0.0  ;;  %v379_v40 = vmax.f32 %v309_v32, 0.0 }
  0xe3   :  { %393 = vst.msk [vmem:[%s798_s3] sm:$0xff] %vm392_vm1, %v360_v35  ;;  %409 = vst.msk [vmem:[%s798_s3 + $0x80] sm:$0xff] %vm392_vm1, %v376_v36  ;;  %v361_v41 = vmax.f32 %v237_v37, 0.0  ;;  %v377_v42 = vmax.f32 %v301_v38, 0.0 }
  0xe4   :  { %396 = vst.msk [vmem:[%s798_s3 + $0x18] sm:$0xff] %vm392_vm1, %v363_v39  ;;  %412 = vst.msk [vmem:[%s798_s3 + $0x98] sm:$0xff] %vm392_vm1, %v379_v40 }
  0xe5   :  { %394 = vst.msk [vmem:[%s798_s3 + $0x8] sm:$0xff] %vm392_vm1, %v361_v41  ;;  %410 = vst.msk [vmem:[%s798_s3 + $0x88] sm:$0xff] %vm392_vm1, %v377_v42  ;;  %v492_v43 = vpop.f32.mrb[4].mxu0  ;;  %v508_v44 = vpop.f32.mrb[4].mxu1 }
  0xe6   :  { %v258_v45 = vadd.f32 %v492_v43, %v633_v18  ;;  %v322_v46 = vadd.f32 %v508_v44, %v633_v18  ;;  %v249_v47 = vpop.f32.mrb[5].mxu0  ;;  %v313_v48 = vpop.f32.mrb[5].mxu1 }
  0xe7   :  { %v250_v49 = vadd.f32 %v633_v18, %v249_v47  ;;  %v314_v50 = vadd.f32 %v633_v18, %v313_v48  ;;  %v493_v51 = vpop.f32.mrb[6].mxu0  ;;  %v509_v52 = vpop.f32.mrb[6].mxu1 }
  0xe8   :  { %v366_v53 = vmax.f32 %v258_v45, 0.0  ;;  %v382_v54 = vmax.f32 %v322_v46, 0.0  ;;  %v261_v55 = vadd.f32 %v493_v51, %v633_v18  ;;  %v325_v56 = vadd.f32 %v509_v52, %v633_v18  ;;  %v252_v57 = vpop.f32.mrb[7].mxu0  ;;  %v316_v58 = vpop.f32.mrb[7].mxu1 }
  0xe9   :  { %v364_v59 = vmax.f32 %v250_v49, 0.0  ;;  %v380_v60 = vmax.f32 %v314_v50, 0.0  ;;  %v253_v61 = vadd.f32 %v633_v18, %v252_v57  ;;  %v317_v62 = vadd.f32 %v633_v18, %v316_v58 }
  0xea   :  { %399 = vst.msk [vmem:[%s798_s3 + $0x30] sm:$0xff] %vm392_vm1, %v366_v53  ;;  %415 = vst.msk [vmem:[%s798_s3 + $0xb0] sm:$0xff] %vm392_vm1, %v382_v54  ;;  %v367_v63 = vmax.f32 %v261_v55, 0.0  ;;  %v383_v0 = vmax.f32 %v325_v56, 0.0 }
  0xeb   :  { %397 = vst.msk [vmem:[%s798_s3 + $0x20] sm:$0xff] %vm392_vm1, %v364_v59  ;;  %413 = vst.msk [vmem:[%s798_s3 + $0xa0] sm:$0xff] %vm392_vm1, %v380_v60  ;;  %v365_v1 = vmax.f32 %v253_v61, 0.0  ;;  %v381_v2 = vmax.f32 %v317_v62, 0.0 }
  0xec   :  { %400 = vst.msk [vmem:[%s798_s3 + $0x38] sm:$0xff] %vm392_vm1, %v367_v63  ;;  %416 = vst.msk [vmem:[%s798_s3 + $0xb8] sm:$0xff] %vm392_vm1, %v383_v0 }
  0xed   :  { %398 = vst.msk [vmem:[%s798_s3 + $0x28] sm:$0xff] %vm392_vm1, %v365_v1  ;;  %414 = vst.msk [vmem:[%s798_s3 + $0xa8] sm:$0xff] %vm392_vm1, %v381_v2  ;;  %v496_v3 = vpop.f32.mrb[8].mxu0  ;;  %v512_v4 = vpop.f32.mrb[8].mxu1 }
  0xee   :  { %v274_v5 = vadd.f32 %v496_v3, %v633_v18  ;;  %v338_v6 = vadd.f32 %v512_v4, %v633_v18  ;;  %v265_v7 = vpop.f32.mrb[9].mxu0  ;;  %v329_v8 = vpop.f32.mrb[9].mxu1 }
  0xef   :  { %v266_v9 = vadd.f32 %v633_v18, %v265_v7  ;;  %v330_v10 = vadd.f32 %v633_v18, %v329_v8  ;;  %v497_v11 = vpop.f32.mrb[10].mxu0  ;;  %v513_v12 = vpop.f32.mrb[10].mxu1 }
  0xf0   :  { %v370_v13 = vmax.f32 %v274_v5, 0.0  ;;  %v386_v14 = vmax.f32 %v338_v6, 0.0  ;;  %v277_v15 = vadd.f32 %v497_v11, %v633_v18  ;;  %v341_v16 = vadd.f32 %v513_v12, %v633_v18  ;;  %v268_v17 = vpop.f32.mrb[11].mxu0  ;;  %v332_v19 = vpop.f32.mrb[11].mxu1 }
  0xf1   :  { %v368_v20 = vmax.f32 %v266_v9, 0.0  ;;  %v384_v21 = vmax.f32 %v330_v10, 0.0  ;;  %v269_v22 = vadd.f32 %v633_v18, %v268_v17  ;;  %v333_v23 = vadd.f32 %v633_v18, %v332_v19 }
  0xf2   :  { %403 = vst.msk [vmem:[%s798_s3 + $0x50] sm:$0xff] %vm392_vm1, %v370_v13  ;;  %419 = vst.msk [vmem:[%s798_s3 + $0xd0] sm:$0xff] %vm392_vm1, %v386_v14  ;;  %v371_v24 = vmax.f32 %v277_v15, 0.0  ;;  %v387_v25 = vmax.f32 %v341_v16, 0.0 }
  0xf3   :  { %401 = vst.msk [vmem:[%s798_s3 + $0x40] sm:$0xff] %vm392_vm1, %v368_v20  ;;  %417 = vst.msk [vmem:[%s798_s3 + $0xc0] sm:$0xff] %vm392_vm1, %v384_v21  ;;  %v369_v26 = vmax.f32 %v269_v22, 0.0  ;;  %v385_v27 = vmax.f32 %v333_v23, 0.0 }
  0xf4   :  { %404 = vst.msk [vmem:[%s798_s3 + $0x58] sm:$0xff] %vm392_vm1, %v371_v24  ;;  %420 = vst.msk [vmem:[%s798_s3 + $0xd8] sm:$0xff] %vm392_vm1, %v387_v25 }
  0xf5   :  { %402 = vst.msk [vmem:[%s798_s3 + $0x48] sm:$0xff] %vm392_vm1, %v369_v26  ;;  %418 = vst.msk [vmem:[%s798_s3 + $0xc8] sm:$0xff] %vm392_vm1, %v385_v27  ;;  %v500_v28 = vpop.f32.mrb[12].mxu0  ;;  %v516_v29 = vpop.f32.mrb[12].mxu1 }
  0xf6   :  { %v290_v30 = vadd.f32 %v500_v28, %v633_v18  ;;  %v354_v31 = vadd.f32 %v516_v29, %v633_v18  ;;  %v281_v32 = vpop.f32.mrb[13].mxu0  ;;  %v345_v33 = vpop.f32.mrb[13].mxu1 }
  0xf7   :  { %v282_v34 = vadd.f32 %v633_v18, %v281_v32  ;;  %v346_v35 = vadd.f32 %v633_v18, %v345_v33  ;;  %v501_v36 = vpop.f32.mrb[14].mxu0  ;;  %v517_v37 = vpop.f32.mrb[14].mxu1 }
  0xf8   :  { %v374_v38 = vmax.f32 %v290_v30, 0.0  ;;  %v390_v39 = vmax.f32 %v354_v31, 0.0  ;;  %v293_v40 = vadd.f32 %v501_v36, %v633_v18  ;;  %v357_v41 = vadd.f32 %v517_v37, %v633_v18  ;;  %v284_v42 = vpop.f32.mrb[15].mxu0  ;;  %v348_v43 = vpop.f32.mrb[15].mxu1 }
  0xf9   :  { %v372_v44 = vmax.f32 %v282_v34, 0.0  ;;  %v388_v45 = vmax.f32 %v346_v35, 0.0  ;;  %v285_v46 = vadd.f32 %v633_v18, %v284_v42  ;;  %v349_v47 = vadd.f32 %v633_v18, %v348_v43 }
  0xfa   :  { %407 = vst.msk [vmem:[%s798_s3 + $0x70] sm:$0xff] %vm392_vm1, %v374_v38  ;;  %423 = vst.msk [vmem:[%s798_s3 + $0xf0] sm:$0xff] %vm392_vm1, %v390_v39  ;;  %v375_v48 = vmax.f32 %v293_v40, 0.0  ;;  %v391_v49 = vmax.f32 %v357_v41, 0.0 }
  0xfb   :  { %405 = vst.msk [vmem:[%s798_s3 + $0x60] sm:$0xff] %vm392_vm1, %v372_v44  ;;  %421 = vst.msk [vmem:[%s798_s3 + $0xe0] sm:$0xff] %vm392_vm1, %v388_v45  ;;  %v373_v18 = vmax.f32 %v285_v46, 0.0  ;;  %v389_v50 = vmax.f32 %v349_v47, 0.0 }
  0xfc   :  { %408 = vst.msk [vmem:[%s798_s3 + $0x78] sm:$0xff] %vm392_vm1, %v375_v48  ;;  %424 = vst.msk [vmem:[%s798_s3 + $0xf8] sm:$0xff] %vm392_vm1, %v391_v49 }
  0xfd   :  { %406 = vst.msk [vmem:[%s798_s3 + $0x68] sm:$0xff] %vm392_vm1, %v373_v18  ;;  %422 = vst.msk [vmem:[%s798_s3 + $0xe8] sm:$0xff] %vm392_vm1, %v389_v50 }

// kernel: basenet_forward.5
= control target key start
LH: loop header
LB: loop body
LE: loop exit
PB: predicated region body
PF: predicated region fallthrough
CT: control target
= control target key end

     0   :  { %v299_v0 = vmov 0   ;;  %vm138_vm0 = vcmask 130048   ;;  %vm224_vm1 = vcmask 261120   ;;  %s410_s1 = inlined_call_operand.vmem [shape: bf16[144,32], index: 1, kind: input, shape index: {}]   ;;  %s411_s0 = inlined_call_operand.vmem [shape: bf16[64,144], index: 0, kind: input, shape index: {}]   ;;  %s412_s2 = inlined_call_operand.vmem [shape: f32[1,32], index: 2, kind: input, shape index: {}]   ;;  %s413_s3 = inlined_call_operand.vmem [shape: f32[64,32], index: 3, kind: output, shape index: {}]  }
   0x1   :  { %151 = vmatprep.subr.bf16.mxu0 %v299_v0  ;;  %259 = vmatprep.subr.bf16.mxu1 %v299_v0  ;;  %v278_v1 = vld [vmem:[%s410_s1] sm:$0xff]   ;;  %v279_v2 = vld [vmem:[%s410_s1 + $0x8] sm:$0xff]   ;;  %v280_v3 = vld [vmem:[%s410_s1 + $0x10] sm:$0xff]  }
   0x2   :  { %152 = vmatpush1.bf16.msra.mxu0 %v278_v1  ;;  %268 = vmatpush1.bf16.msra.mxu1 %v278_v1  ;;  %v281_v4 = vld [vmem:[%s410_s1 + $0x18] sm:$0xff]   ;;  %v289_v5 = vld [vmem:[%s411_s0 + $0x4] ss:$8 sps:$4 sm:$0xff]   ;;  %v284_v9 = vld [vmem:[%s410_s1 + $0x30] sm:$0xff]  }
   0x3   :  { %153 = vmatprep.subr.bf16.mxu0 %v299_v0  ;;  %260 = vmatprep.subr.bf16.mxu1 %v299_v0  ;;  %v292_v6 = vld [vmem:[%s411_s0 + $0x24] ss:$8 sps:$4 sm:$0xff]   ;;  %v285_v10 = vld [vmem:[%s410_s1 + $0x38] sm:$0xff]   ;;  %v287_v12 = vld [vmem:[%s411_s0] ss:$8 sps:$4 sm:$0xff]  }
   0x4   :  { %255 = vmatprep.mubr.msk.bf16.mxu0 %vm138_vm0, %v289_v5  ;;  %257 = vmatprep.mubr.msk.bf16.mxu1 %vm138_vm0, %v292_v6  ;;  %v282_v7 = vld [vmem:[%s410_s1 + $0x20] sm:$0xff]   ;;  %v283_v8 = vld [vmem:[%s410_s1 + $0x28] sm:$0xff]   ;;  %v293_v14 = vld [vmem:[%s411_s0 + $0x14] ss:$8 sps:$4 sm:$0xff]  }
   0x5   :  { %v286_v11 = vld [vmem:[%s410_s1 + $0x40] sm:$0xff]   ;;  %v295_v15 = vld [vmem:[%s411_s0 + $0x34] ss:$8 sps:$4 sm:$0xff]   ;;  %v297_v16 = vld [vmem:[%s411_s0 + $0x10] ss:$8 sps:$4 sm:$0xff]  }
   0x6   :  { %154 = vmatpush1.bf16.msra.mxu0 %v279_v2  ;;  %269 = vmatpush1.bf16.msra.mxu1 %v279_v2  ;;  %v290_v13 = vld [vmem:[%s411_s0 + $0x20] ss:$8 sps:$4 sm:$0xff]   ;;  %v298_v17 = vld [vmem:[%s411_s0 + $0x30] ss:$8 sps:$4 sm:$0xff]  }
   0x7   :  { %155 = vmatprep.subr.bf16.mxu0 %v299_v0  ;;  %261 = vmatprep.subr.bf16.mxu1 %v299_v0  ;;  %v237_v18 = vld [vmem:[%s412_s2] ss:$0 sm:$0xff] }
   0xa   :  { %156 = vmatpush1.bf16.msra.mxu0 %v280_v3  ;;  %270 = vmatpush1.bf16.msra.mxu1 %v280_v3 }
   0xb   :  { %157 = vmatprep.subr.bf16.mxu0 %v299_v0  ;;  %262 = vmatprep.subr.bf16.mxu1 %v299_v0 }
   0xe   :  { %158 = vmatpush1.bf16.msra.mxu0 %v281_v4  ;;  %271 = vmatpush1.bf16.msra.mxu1 %v281_v4 }
   0xf   :  { %159 = vmatprep.subr.bf16.mxu0 %v299_v0  ;;  %263 = vmatprep.subr.bf16.mxu1 %v299_v0 }
  0x12   :  { %160 = vmatpush1.bf16.msra.mxu0 %v282_v7  ;;  %272 = vmatpush1.bf16.msra.mxu1 %v282_v7 }
  0x13   :  { %161 = vmatprep.subr.bf16.mxu0 %v299_v0  ;;  %264 = vmatprep.subr.bf16.mxu1 %v299_v0 }
  0x16   :  { %162 = vmatpush1.bf16.msra.mxu0 %v283_v8  ;;  %273 = vmatpush1.bf16.msra.mxu1 %v283_v8 }
  0x17   :  { %163 = vmatprep.subr.bf16.mxu0 %v299_v0  ;;  %265 = vmatprep.subr.bf16.mxu1 %v299_v0 }
  0x1a   :  { %164 = vmatpush1.bf16.msra.mxu0 %v284_v9  ;;  %274 = vmatpush1.bf16.msra.mxu1 %v284_v9 }
  0x1b   :  { %165 = vmatprep.subr.bf16.mxu0 %v299_v0  ;;  %266 = vmatprep.subr.bf16.mxu1 %v299_v0 }
  0x1e   :  { %166 = vmatpush1.bf16.msra.mxu0 %v285_v10  ;;  %275 = vmatpush1.bf16.msra.mxu1 %v285_v10 }
  0x1f   :  { %167 = vmatprep.subr.bf16.mxu0 %v299_v0  ;;  %267 = vmatprep.subr.bf16.mxu1 %v299_v0 }
  0x22   :  { %168 = vmatpush1.bf16.msra.mxu0 %v286_v11  ;;  %276 = vmatpush1.bf16.msra.mxu1 %v286_v11 }
  0x25   :  { %184 = vmatmul.mubr.bf16.vlgmr.msra.gmra.mrb[0].mxu0 %v287_v12  ;;  %200 = vmatmul.mubr.bf16.vlgmr.msra.gmra.mrb[0].mxu1 %v290_v13 }
  0x26   :  { %256 = vmatprep.mubr.msk.bf16.mxu0 %vm138_vm0, %v293_v14  ;;  %258 = vmatprep.mubr.msk.bf16.mxu1 %vm138_vm0, %v295_v15 }
  0x2d   :  { %192 = vmatmul.mubr.bf16.gmra.mrb[4].mxu0 %v297_v16  ;;  %208 = vmatmul.mubr.bf16.gmra.mrb[4].mxu1 %v298_v17 }
  0xf8   :  { %v185_v19 = vpop.f32.mrb[0].mxu0  ;;  %v201_v20 = vpop.f32.mrb[0].mxu1 }
  0xf9   :  { %v186_v21 = vadd.f32 %v237_v18, %v185_v19  ;;  %v202_v22 = vadd.f32 %v237_v18, %v201_v20  ;;  %v187_v23 = vpop.f32.mrb[1].mxu0  ;;  %v203_v24 = vpop.f32.mrb[1].mxu1 }
  0xfa   :  { %v188_v25 = vpop.f32.mrb[2].mxu0  ;;  %v204_v26 = vpop.f32.mrb[2].mxu1 }
  0xfb   :  { %v216_v27 = vmax.f32 %v186_v21, 0.0  ;;  %v220_v28 = vmax.f32 %v202_v22, 0.0  ;;  %v189_v29 = vadd.f32 %v237_v18, %v188_v25  ;;  %v205_v30 = vadd.f32 %v237_v18, %v204_v26  ;;  %v190_v31 = vpop.f32.mrb[3].mxu0  ;;  %v206_v32 = vpop.f32.mrb[3].mxu1 }
  0xfd   :  { %225 = vst.msk [vmem:[%s413_s3] sm:$0xff] %vm224_vm1, %v216_v27  ;;  %229 = vst.msk [vmem:[%s413_s3 + $0x20] sm:$0xff] %vm224_vm1, %v220_v28  ;;  %v217_v33 = vmax.f32 %v189_v29, 0.0  ;;  %v221_v34 = vmax.f32 %v205_v30, 0.0 }
  0xff   :  { %226 = vst.msk [vmem:[%s413_s3 + $0x8] sm:$0xff] %vm224_vm1, %v217_v33  ;;  %230 = vst.msk [vmem:[%s413_s3 + $0x28] sm:$0xff] %vm224_vm1, %v221_v34 }
 0x100   :  { %v193_v35 = vpop.f32.mrb[4].mxu0  ;;  %v209_v36 = vpop.f32.mrb[4].mxu1 }
 0x101   :  { %v194_v37 = vadd.f32 %v237_v18, %v193_v35  ;;  %v210_v38 = vadd.f32 %v237_v18, %v209_v36  ;;  %v195_v39 = vpop.f32.mrb[5].mxu0  ;;  %v211_v40 = vpop.f32.mrb[5].mxu1 }
 0x102   :  { %v196_v41 = vpop.f32.mrb[6].mxu0  ;;  %v212_v42 = vpop.f32.mrb[6].mxu1 }
 0x103   :  { %v218_v43 = vmax.f32 %v194_v37, 0.0  ;;  %v222_v44 = vmax.f32 %v210_v38, 0.0  ;;  %v197_v45 = vadd.f32 %v237_v18, %v196_v41  ;;  %v213_v46 = vadd.f32 %v237_v18, %v212_v42  ;;  %v198_v47 = vpop.f32.mrb[7].mxu0  ;;  %v214_v48 = vpop.f32.mrb[7].mxu1 }
 0x105   :  { %227 = vst.msk [vmem:[%s413_s3 + $0x10] sm:$0xff] %vm224_vm1, %v218_v43  ;;  %231 = vst.msk [vmem:[%s413_s3 + $0x30] sm:$0xff] %vm224_vm1, %v222_v44  ;;  %v219_v49 = vmax.f32 %v197_v45, 0.0  ;;  %v223_v50 = vmax.f32 %v213_v46, 0.0 }
 0x107   :  { %228 = vst.msk [vmem:[%s413_s3 + $0x18] sm:$0xff] %vm224_vm1, %v219_v49  ;;  %232 = vst.msk [vmem:[%s413_s3 + $0x38] sm:$0xff] %vm224_vm1, %v223_v50 }

// kernel: basenet_forward.6
= control target key start
LH: loop header
LB: loop body
LE: loop exit
PB: predicated region body
PF: predicated region fallthrough
CT: control target
= control target key end

     0   :  { %vm231_vm0 = vcmask 261120   ;;  %vm336_vm1 = vcmask 64512   ;;  %s578_s2 = inlined_call_operand.vmem [shape: bf16[288,8], index: 2, kind: input, shape index: {}]   ;;  %s579_s0 = inlined_call_operand.vmem [shape: bf16[32,288], index: 0, kind: input, shape index: {}]   ;;  %s580_s1 = inlined_call_operand.vmem [shape: bf16[32,288], index: 1, kind: input, shape index: {}]   ;;  %s581_s3 = inlined_call_operand.vmem [shape: f32[1,8], index: 3, kind: input, shape index: {}]   ;;  %s582_s4 = inlined_call_operand.vmem [shape: f32[32,8], index: 4, kind: output, shape index: {}]  }
   0x1   :  { %v412_v0 = vld [vmem:[%s578_s2 + $0x40] sm:$0xff]   ;;  %v414_v2 = vld [vmem:[%s578_s2 + $0x48] sm:$0xff]   ;;  %v416_v4 = vld [vmem:[%s578_s2 + $0x50] sm:$0xff]  }
   0x2   :  { %v413_v1 = vld [vmem:[%s578_s2] sm:$0xff]   ;;  %372 = vmatprep.subr.bf16.mxu0 %v412_v0  ;;  %v415_v3 = vld [vmem:[%s578_s2 + $0x8] sm:$0xff]   ;;  %v417_v5 = vld [vmem:[%s578_s2 + $0x10] sm:$0xff]  }
   0x3   :  { %373 = vmatpush3.bf16.msra.mxu0 %v413_v1  ;;  %v418_v6 = vld [vmem:[%s578_s2 + $0x58] sm:$0xff]   ;;  %v420_v8 = vld [vmem:[%s578_s2 + $0x60] sm:$0xff]   ;;  %v422_v11 = vld [vmem:[%s578_s2 + $0x68] sm:$0xff]  }
   0x4   :  { %374 = vmatprep.subr.bf16.mxu0 %v414_v2  ;;  %v419_v7 = vld [vmem:[%s578_s2 + $0x18] sm:$0xff]   ;;  %v421_v9 = vld [vmem:[%s578_s2 + $0x20] sm:$0xff]   ;;  %v423_v12 = vld [vmem:[%s578_s2 + $0x28] sm:$0xff]  }
   0x5   :  { %v427_v10 = vld [vmem:[%s578_s2 + $0x80] sm:$0xff]   ;;  %v20_v14 = vld [vmem:[%s580_s1 + $0xc] sm:$0xff]  ;;  %v19_v21 = vld [vmem:[%s580_s1 + $0x8] sm:$0xf] }
   0x6   :  { %404 = vmatprep.subr.bf16.mxu1 %v427_v10  ;;  %v18_v13 = vld [vmem:[%s580_s1] sm:$0xff]  ;;  %v424_v16 = vld [vmem:[%s578_s2 + $0x70] sm:$0xff]   ;;  %v429_v20 = vld [vmem:[%s578_s2 + $0x88] sm:$0xff]  }
   0x7   :  { %375 = vmatpush3.bf16.msra.mxu0 %v415_v3  ;;  %v26_v15 = vld [vmem:[%s579_s0] sm:$0xff]  ;;  %405 = vmatpush3.bf16.msra.mxu1 %v427_v10  ;;  %v28_v17 = vld [vmem:[%s579_s0 + $0xc] sm:$0xff]  ;;  %v21_v22 = vld [vmem:[%s580_s1 + $0x14] sm:$0xf] }
   0x8   :  { %376 = vmatprep.subr.bf16.mxu0 %v416_v4  ;;  %v34_v18 = vsub.bf16 %v18_v13, %v26_v15  ;;  %v36_v19 = vsub.bf16 %v20_v14, %v28_v17  ;;  %v27_v24 = vld [vmem:[%s579_s0 + $0x8] sm:$0xf]  ;;  %v29_v25 = vld [vmem:[%s579_s0 + $0x14] sm:$0xf]  ;;  %406 = vmatprep.subr.bf16.mxu1 %v429_v20  ;;  %v23_v30 = vld [vmem:[%s580_s1 + $0x20] sm:$0xf] }
   0x9   :  { %v425_v26 = vld [vmem:[%s578_s2 + $0x30] sm:$0xff]   ;;  %v35_v28 = vsub.bf16 %v19_v21, %v27_v24  ;;  %v37_v29 = vsub.bf16 %v21_v22, %v29_v25  ;;  %v25_v31 = vld [vmem:[%s580_s1 + $0x2c] sm:$0xf]  ;;  %v31_v32 = vld [vmem:[%s579_s0 + $0x20] sm:$0xf] }
   0xa   :  { %v42_v23 = vand.u32 2147450879, %v34_v18  ;;  %v44_v27 = vand.u32 2147450879, %v36_v19  ;;  %v33_v33 = vld [vmem:[%s579_s0 + $0x2c] sm:$0xf]  ;;  %v39_v41 = vsub.bf16 %v23_v30, %v31_v32 }
   0xb   :  { %377 = vmatpush3.bf16.msra.mxu0 %v417_v5  ;;  %407 = vmatpush3.bf16.msra.mxu1 %v429_v20  ;;  %v22_v34 = vld [vmem:[%s580_s1 + $0x18] sm:$0xff]  ;;  %v43_v36 = vand.u32 2147450879, %v35_v28  ;;  %v45_v37 = vand.u32 2147450879, %v37_v29  ;;  %v24_v38 = vld [vmem:[%s580_s1 + $0x24] sm:$0xff]  ;;  %v41_v42 = vsub.bf16 %v25_v31, %v33_v33 }
   0xc   :  { %378 = vmatprep.subr.bf16.mxu0 %v418_v6  ;;  %v347_v35 = vcombine.high %v42_v23, %v44_v27  ;;  %v30_v39 = vld [vmem:[%s579_s0 + $0x18] sm:$0xff]  ;;  %v32_v43 = vld [vmem:[%s579_s0 + $0x24] sm:$0xff]  ;;  %v47_v47 = vand.u32 2147450879, %v39_v41  ;;  %v346_v53 = vcombine.low %v42_v23, %v44_v27  ;;  %v345_v62 = vld [vmem:[%s581_s3] ss:$0 sm:$0xff] }
   0xd   :  { %v426_v40 = vld [vmem:[%s578_s2 + $0x78] sm:$0xff]   ;;  %v38_v44 = vsub.bf16 %v22_v34, %v30_v39  ;;  %v348_v45 = vcombine.low %v43_v36, %v45_v37  ;;  %v40_v46 = vsub.bf16 %v24_v38, %v32_v43  ;;  %v49_v48 = vand.u32 2147450879, %v41_v42 }
   0xe   :  { %270 = vmatprep.mubr.bf16.mxu0 %v347_v35  ;;  %v428_v49 = vld [vmem:[%s578_s2 + $0x38] sm:$0xff]  }
   0xf   :  { %379 = vmatpush3.bf16.msra.mxu0 %v419_v7  ;;  %408 = vmatprep.mubr.msk.bf16.mxu1 %vm231_vm0, %v348_v45  ;;  %v46_v50 = vand.u32 2147450879, %v38_v44  ;;  %v48_v51 = vand.u32 2147450879, %v40_v46  ;;  %v351_v52 = vcombine.low %v47_v47, %v49_v48 }
  0x10   :  { %380 = vmatprep.subr.bf16.mxu0 %v420_v8 }
  0x11   :  { %409 = vmatmul.mubr.msk.bf16.vlgmr.msra.gmra.mrb[0].mxu1 %vm231_vm0, %v351_v52  ;;  %v350_v54 = vcombine.high %v46_v50, %v48_v51  ;;  %v349_v55 = vcombine.low %v46_v50, %v48_v51 }
  0x13   :  { %381 = vmatpush3.bf16.msra.mxu0 %v421_v9 }
  0x14   :  { %382 = vmatprep.subr.bf16.mxu0 %v422_v11 }
  0x17   :  { %383 = vmatpush3.bf16.msra.mxu0 %v423_v12 }
  0x18   :  { %384 = vmatprep.subr.bf16.mxu0 %v424_v16 }
  0x1b   :  { %385 = vmatpush3.bf16.msra.mxu0 %v425_v26 }
  0x1c   :  { %386 = vmatprep.subr.bf16.mxu0 %v426_v40 }
  0x1f   :  { %387 = vmatpush3.bf16.msra.mxu0 %v428_v49 }
  0x22   :  { %271 = vmatmul.mubr.bf16.vlgmr.msra.gmra.mrb[0].mxu0 %v346_v53 }
  0x23   :  { %278 = vmatprep.mubr.bf16.mxu0 %v350_v54 }
  0x2a   :  { %279 = vmatmul.mubr.bf16.gmra.mrb[4].mxu0 %v349_v55 }
  0xe4   :  { %v410_v56 = vpop.f32.mrb[0].mxu1 }
  0xe5   :  { %v321_v57 = vpop.f32.mrb[1].mxu1 }
  0xe6   :  { %v411_v58 = vpop.f32.mrb[2].mxu1 }
  0xe7   :  { %v324_v59 = vpop.f32.mrb[3].mxu1 }
  0xf5   :  { %v388_v60 = vpop.f32.mrb[0].mxu0 }
  0xf6   :  { %v389_v61 = vpop.f32.mrb[1].mxu0 }
  0xf7   :  { %v390_v63 = vadd.f32 %v389_v61, %v388_v60  ;;  %v391_v0 = vpop.f32.mrb[2].mxu0 }
  0xf8   :  { %v392_v1 = vpop.f32.mrb[3].mxu0 }
  0xf9   :  { %v393_v2 = vadd.f32 %v392_v1, %v391_v0  ;;  %v273_v3 = vadd.f32 %v390_v63, %v345_v62 }
  0xfb   :  { %v322_v4 = vadd.f32 %v321_v57, %v273_v3  ;;  %v276_v5 = vadd.f32 %v393_v2, %v345_v62 }
  0xfd   :  { %337 = vst.msk [vmem:[%s582_s4] sm:$0xff] %vm336_vm1, %v322_v4  ;;  %v325_v6 = vadd.f32 %v324_v59, %v276_v5  ;;  %v394_v7 = vpop.f32.mrb[4].mxu0 }
  0xfe   :  { %v395_v8 = vpop.f32.mrb[5].mxu0 }
  0xff   :  { %338 = vst.msk [vmem:[%s582_s4 + $0x8] sm:$0xff] %vm336_vm1, %v325_v6  ;;  %v396_v9 = vadd.f32 %v395_v8, %v394_v7  ;;  %v397_v10 = vpop.f32.mrb[6].mxu0 }
 0x100   :  { %v398_v11 = vpop.f32.mrb[7].mxu0 }
 0x101   :  { %v281_v12 = vadd.f32 %v396_v9, %v345_v62  ;;  %v399_v13 = vadd.f32 %v398_v11, %v397_v10 }
 0x103   :  { %v330_v14 = vadd.f32 %v410_v56, %v281_v12  ;;  %v284_v15 = vadd.f32 %v399_v13, %v345_v62 }
 0x105   :  { %339 = vst.msk [vmem:[%s582_s4 + $0x10] sm:$0xff] %vm336_vm1, %v330_v14  ;;  %v333_v16 = vadd.f32 %v411_v58, %v284_v15 }
 0x107   :  { %340 = vst.msk [vmem:[%s582_s4 + $0x18] sm:$0xff] %vm336_vm1, %v333_v16 }

// kernel: basenet_forward.7
= control target key start
LH: loop header
LB: loop body
LE: loop exit
PB: predicated region body
PF: predicated region fallthrough
CT: control target
= control target key end

     0   :  { %vm26_vm0 = vcmask 1043456   ;;  %vm19_vm1 = vcmask 31744   ;;  %s914_s0 = inlined_call_operand.vmem [shape: f32[4,4,4], index: 0, kind: input, shape index: {}]   ;;  %s915_s1 = inlined_call_operand.vmem [shape: f32[16,4], index: 1, kind: input, shape index: {}]   ;;  %s916_s2 = inlined_call_operand.vmem [shape: f32[4,16], index: 2, kind: input, shape index: {}]   ;;  %s917_s3 = inlined_call_operand.hbm [shape: f32[4,16,16], index: 3, kind: output, shape index: {}]  }
   0x1   :  { %v18_v0 = vld [vmem:[%s914_s0] sm:$0xf]  ;;  %v16_v2 = vld [vmem:[%s915_s1 + $0x8] sm:$0xff]  ;;  %v706_v3 = vld [vmem:[%s914_s0 + $0x4] sm:$0xf] }
   0x2   :  { %v15_v1 = vld [vmem:[%s915_s1] sm:$0xff]  ;;  %751 = vmatprep.subr.msk.mxu0 %vm26_vm0, %v18_v0  ;;  %v713_v4 = vld [vmem:[%s914_s0 + $0x8] sm:$0xf] }
   0x3   :  { %753 = vmatprep.mubr.msk.f32.mxu0 %vm19_vm1, %v15_v1  ;;  %752 = vmatpush3.msk.msra.mxu0 %vm26_vm0, %v18_v0 }
   0x4   :  { %8 = vsyncpa [#allocation3], 0  ;;  %754 = vmatmul.mubr.msk.f32.vlgmr.msra.gmra.mrb[0].mxu0 %vm19_vm1, %v16_v2  ;;  %761 = vmatprep.subr.msk.mxu0 %vm26_vm0, %v706_v3  ;;  %v720_v5 = vld [vmem:[%s914_s0 + $0xc] sm:$0xf]  ;;  %v17_v6 = vld [vmem:[%s916_s2] sm:$0xf] }
   0x5   :  { %762 = vmatpush3.msk.msra.mxu0 %vm26_vm0, %v706_v3  ;;  %763 = vmatprep.mubr.msk.f32.mxu0 %vm19_vm1, %v15_v1  ;;  %vm189_vm2 = vcmask 130048   ;;  %s818_s0 = smov [#allocation2]  }
   0x6   :  { %771 = vmatprep.subr.msk.mxu0 %vm26_vm0, %v713_v4  ;;  %756 = vmatprep.subr.msk.mxu1 %vm26_vm0, %v17_v6  ;;  %s689_s2 = sshll.u32 %s818_s0, 4  ;;  %s690_s2 = int_to_ptr.vmem [resolvable:$true] %s689_s2 }
   0x7   :  { %757 = vmatpush3.msk.msra.mxu1 %vm26_vm0, %v17_v6  ;;  %s794_s25 = scalar_lea.vmem %s690_s2, 1024  ;;  %p799_p1 = scmp.lt.s32.totalorder %s690_s2, %s690_s2 }
   0x8   :  { %764 = vmatmul.mubr.msk.f32.vlgmr.msra.gmra.mrb[2].mxu0 %vm19_vm1, %v16_v2  ;;  %766 = vmatprep.subr.msk.mxu1 %vm26_vm0, %v17_v6  ;;  %p795_p0 = scmp.ne.s32.totalorder %s690_s2, %s794_s25  ;;  %p800_p2 = scmp.lt.s32.totalorder %s794_s25, %s794_s25 }
   0x9   :  { %772 = vmatpush3.msk.msra.mxu0 %vm26_vm0, %v713_v4  ;;  %773 = vmatprep.mubr.msk.f32.mxu0 %vm19_vm1, %v15_v1 }
   0xa   :  { %781 = vmatprep.subr.msk.mxu0 %vm26_vm0, %v720_v5  ;;  %p801_p3 = por %p800_p2, %p799_p1 }
   0xc   :  { %774 = vmatmul.mubr.msk.f32.vlgmr.msra.gmra.mrb[4].mxu0 %vm19_vm1, %v16_v2  ;;  %p802_p4 = pnand %p801_p3, %p795_p0 }
   0xd   :  { %782 = vmatpush3.msk.msra.mxu0 %vm26_vm0, %v720_v5  ;;  %783 = vmatprep.mubr.msk.f32.mxu0 %vm19_vm1, %v15_v1 }
  0x10   :  { %784 = vmatmul.mubr.msk.f32.vlgmr.msra.gmra.mrb[6].mxu0 %vm19_vm1, %v16_v2 }
  0xd7   :  { %v755_v7 = vpop.f32.mrb[0].mxu0 }
  0xd8   :  { %v96_v8 = vpop.f32.mrb[1].mxu0 }
  0xd9   :  { %758 = vmatprep.mubr.msk.f32.mxu1 %vm19_vm1, %v96_v8 }
  0xda   :  { %759 = vmatmul.mubr.msk.f32.vlgmr.msra.gmra.mrb[0].mxu1 %vm19_vm1, %v755_v7 }
  0xdb   :  { %v765_v9 = vpop.f32.mrb[2].mxu0  ;;  %767 = vmatpush3.msk.msra.mxu1 %vm26_vm0, %v17_v6 }
  0xdc   :  { %v263_v10 = vpop.f32.mrb[3].mxu0  ;;  %776 = vmatprep.subr.msk.mxu1 %vm26_vm0, %v17_v6 }
  0xdd   :  { %768 = vmatprep.mubr.msk.f32.mxu1 %vm19_vm1, %v263_v10 }
  0xde   :  { %769 = vmatmul.mubr.msk.f32.vlgmr.msra.gmra.mrb[2].mxu1 %vm19_vm1, %v765_v9 }
  0xdf   :  { %v775_v11 = vpop.f32.mrb[4].mxu0  ;;  %777 = vmatpush3.msk.msra.mxu1 %vm26_vm0, %v17_v6 }
  0xe0   :  { %v427_v12 = vpop.f32.mrb[5].mxu0  ;;  %786 = vmatprep.subr.msk.mxu1 %vm26_vm0, %v17_v6 }
  0xe1   :  { %778 = vmatprep.mubr.msk.f32.mxu1 %vm19_vm1, %v427_v12 }
  0xe2   :  { %779 = vmatmul.mubr.msk.f32.vlgmr.msra.gmra.mrb[4].mxu1 %vm19_vm1, %v775_v11 }
  0xe3   :  { %v785_v13 = vpop.f32.mrb[6].mxu0  ;;  %787 = vmatpush3.msk.msra.mxu1 %vm26_vm0, %v17_v6 }
  0xe4   :  { %v591_v14 = vpop.f32.mrb[7].mxu0 }
  0xe5   :  { %788 = vmatprep.mubr.msk.f32.mxu1 %vm19_vm1, %v591_v14 }
  0xe6   :  { %789 = vmatmul.mubr.msk.f32.vlgmr.msra.gmra.mrb[6].mxu1 %vm19_vm1, %v785_v13 }
 0x1ad   :  { %v760_v15 = vpop.f32.mrb[0].mxu1 }
 0x1ae   :  { %191 = vst.msk [vmem:[#allocation2 + $0x8] sm:$0xff] %vm189_vm2, %v760_v15  ;;  %v180_v16 = vpop.f32.mrb[1].mxu1 }
 0x1af   :  { %190 = vst.msk [vmem:[#allocation2] sm:$0xff] %vm189_vm2, %v180_v16 }
 0x1b1   :  { %v770_v17 = vpop.f32.mrb[2].mxu1 }
 0x1b2   :  { %355 = vst.msk [vmem:[#allocation2 + $0x18] sm:$0xff] %vm189_vm2, %v770_v17  ;;  %v344_v18 = vpop.f32.mrb[3].mxu1 }
 0x1b3   :  { %354 = vst.msk [vmem:[#allocation2 + $0x10] sm:$0xff] %vm189_vm2, %v344_v18 }
 0x1b5   :  { %v780_v19 = vpop.f32.mrb[4].mxu1 }
 0x1b6   :  { %519 = vst.msk [vmem:[#allocation2 + $0x28] sm:$0xff] %vm189_vm2, %v780_v19  ;;  %v508_v20 = vpop.f32.mrb[5].mxu1 }
 0x1b7   :  { %518 = vst.msk [vmem:[#allocation2 + $0x20] sm:$0xff] %vm189_vm2, %v508_v20 }
 0x1b9   :  { %v790_v21 = vpop.f32.mrb[6].mxu1 }
 0x1ba   :  { %683 = vst.msk [vmem:[#allocation2 + $0x38] sm:$0xff] %vm189_vm2, %v790_v21  ;;  %v672_v22 = vpop.f32.mrb[7].mxu1 }
 0x1bb   :  { %682 = vst.msk [vmem:[#allocation2 + $0x30] sm:$0xff] %vm189_vm2, %v672_v22 }
 0x1bc   :  { %805 = shalt.err (!%p802_p4)
}
 0x1bd   :  { %s806_s28 = scalar_lea.hbm %s917_s3, 1024 }
 0x1be   :  { %p807_p5 = scmp.ne.s32.totalorder %s917_s3, %s806_s28  ;;  %p810_p6 = scmp.lt.u32.totalorder %s806_s28, %s917_s3 }
 0x1c0   :  { %p812_p7 = pnand %p810_p6, %p807_p5 }
 0x1c2   :  { %815 = shalt.err (!%p812_p7)
}
 0x1c3   :  { %s819_s6 = smov 128   ;;  %s820_s7 = smov 8  }
 0x1c4   :  { %695 = dma.vmem_to_hbm [thread:$0]  %s690_s2, 1024, %s917_s3, [#allocation3], %s819_s6, %s819_s6, %s820_s7  }
 0x1c5   :  { %816 = dma.done.wait [#allocation3], 1024  }
 0x1c6   :  { %817 = vsyncadd [#allocation3], 4294966272 }
 0x1c7   :  { %699 = vsyncpa [#allocation3], 1 }

</bundles_post_ra>
